<compile_context>
chip_gen: v6e
topology: v6e:2x2x1
jax: 0.10.0
libtpu: 0.0.40
codegen_flags: <defaults>
</compile_context>

<pallas_src>
import functools

import jax
import jax.numpy as jnp
import numpy as np
from jax import lax
from jax.experimental import pallas as pl
from jax.experimental.pallas import tpu as pltpu


def _shift_crop_kernel(shift_ref, x_ref, o_ref, pad_scr, *, bblk, n, pad, c, h, w):
    # shift_ref : SMEM (2, N) int32; row 0 = x (width) shift, row 1 = y (height)
    # x_ref     : VMEM (bblk, c, h, w) unpadded input block (auto-pipelined)
    # o_ref     : VMEM (bblk, c, h, w) output block
    # pad_scr   : VMEM (c, h+2p, w+2p) scratch holding one replicate-padded image
    g = pl.program_id(0)
    hp = h + 2 * pad
    wp = w + 2 * pad

    def body(i, carry):
        b = g * bblk + i

        @pl.when(b < n)  # guard for the (possibly partial) last batch block
        def _():
            sx = shift_ref[0, b]
            sy = shift_ref[1, b]

            # ---- replicate pad in VMEM (static slices + broadcasts only) ----
            pad_scr[:, pad:pad + h, pad:pad + w] = x_ref[i]
            if pad > 0:
                # Left / right columns replicate the first / last image column.
                pad_scr[:, pad:pad + h, 0:pad] = jnp.broadcast_to(
                    pad_scr[:, pad:pad + h, pad:pad + 1], (c, h, pad))
                pad_scr[:, pad:pad + h, pad + w:wp] = jnp.broadcast_to(
                    pad_scr[:, pad:pad + h, pad + w - 1:pad + w], (c, h, pad))
                # Top / bottom rows replicate the already column-padded edge
                # rows, which also fills the four corners correctly.
                pad_scr[:, 0:pad, :] = jnp.broadcast_to(
                    pad_scr[:, pad:pad + 1, :], (c, pad, wp))
                pad_scr[:, pad + h:hp, :] = jnp.broadcast_to(
                    pad_scr[:, pad + h - 1:pad + h, :], (c, pad, wp))

            # ---- crop: dynamic sublane offset, statically unrolled lane offset
            for s in range(2 * pad + 1):  # exactly one branch taken at runtime
                @pl.when(sx == s)
                def _(s=s):
                    o_ref[i] = pad_scr[:, pl.ds(sy, h), s:s + w]

        return carry

    lax.fori_loop(0, bblk, body, 0)


def _choose_batch_block(n, c, h, w, itemsize, target_bytes=8 << 20, max_bblk=64):
    """Images packed per grid step (~8 MiB blocks)."""
    per_img = max(1, c * h * w * itemsize)
    bblk = max(1, min(n, target_bytes // per_img, max_bblk))
    # On multi-TensorCore chips (v7x) >=4 grid steps keep both cores busy and
    # pipelined; only shrink the block for that if blocks stay >= ~1 MiB
    # (on 1-TC v5e/v6e the cap is harmless because it never shrinks below that).
    min_imgs_1mib = max(1, (1 << 20) // per_img)
    if n // 4 >= min_imgs_1mib:
        bblk = min(bblk, n // 4)
    return int(bblk)


def random_shifts_aug(x, shift, pad):
    """x: (N, C, H, W); shift: (N, 2) int in [0, 2*pad]. Returns array like x."""
    n, c, h, w = x.shape
    assert h == w
    # (2, N) layout keeps the SMEM-prefetched table small (long axis last);
    # clamp defensively so a bad shift can never index outside the padded image.
    shift_t = jnp.clip(shift.astype(jnp.int32), 0, 2 * pad).T

    bblk = _choose_batch_block(n, c, h, w, x.dtype.itemsize)
    grid = (pl.cdiv(n, bblk),)

    kernel = functools.partial(
        _shift_crop_kernel, bblk=bblk, n=n, pad=pad, c=c, h=h, w=w)
    grid_spec = pltpu.PrefetchScalarGridSpec(
        num_scalar_prefetch=1,  # shift table -> SMEM
        grid=grid,
        in_specs=[pl.BlockSpec((bblk, c, h, w), lambda g, shift_ref: (g, 0, 0, 0))],
        out_specs=pl.BlockSpec((bblk, c, h, w), lambda g, shift_ref: (g, 0, 0, 0)),
        scratch_shapes=[pltpu.VMEM((c, h + 2 * pad, w + 2 * pad), x.dtype)],
    )
    itemsize = x.dtype.itemsize
    return pl.pallas_call(
        kernel,
        out_shape=jax.ShapeDtypeStruct((n, c, h, w), x.dtype),
        grid_spec=grid_spec,
        compiler_params=pltpu.CompilerParams(
            dimension_semantics=("parallel",),
            vmem_limit_bytes=48 * 1024 * 1024,
        ),
        cost_estimate=pl.CostEstimate(
            flops=0, transcendentals=0,
            bytes_accessed=2 * n * c * h * w * itemsize),
    )(shift_t, x)


def random_shifts_aug_module(x, key, pad):
    """Mirrors the torch module's forward: draws the random shift internally."""
    # TODO(synk): RNG source differs from torch.randint by design; distribution
    # (integer uniform on [0, 2*pad]) is identical.
    n = x.shape[0]
    shift = jax.random.randint(key, (n, 2), 0, 2 * pad + 1, dtype=jnp.int32)
    return random_shifts_aug(x, shift, pad)


def _reference(x, shift, pad):
    # Pure-JAX/NumPy reference: replicate pad + per-batch integer crop.
    n, c, h, w = x.shape
    xp = jnp.pad(x, ((0, 0), (0, 0), (pad, pad), (pad, pad)), mode="edge")
    outs = []
    for b in range(n):
        sx = int(shift[b, 0])
        sy = int(shift[b, 1])
        outs.append(xp[b, :, sy:sy + h, sx:sx + w])
    return jnp.stack(outs, axis=0)


if __name__ == "__main__":
    pad = 4
    n, c, h, w = 2, 4, 16, 16

    key = jax.random.PRNGKey(0)
    kx, ks = jax.random.split(key)
    x = jax.random.normal(kx, (n, c, h, w), dtype=jnp.float32)
    # Equivalent of torch.randint(0, 2*pad+1, (n, 1, 1, 2)); RNG source differs by design.
    shift = jax.random.randint(ks, (n, 2), 0, 2 * pad + 1, dtype=jnp.int32)

    out = jax.block_until_ready(random_shifts_aug(x, shift, pad))
    ref = _reference(x, np.asarray(shift), pad)
    # The crop is pure data movement -> must match bit-exactly.
    np.testing.assert_array_equal(np.asarray(out), np.asarray(ref))

    # Directed asymmetric-shift test (sx != sy) to lock the (x, y) convention,
    # including both extreme offsets (full replicate borders on each side).
    shift2 = jnp.array([[2 * pad, 0], [0, 2 * pad]], dtype=jnp.int32)
    out2 = jax.block_until_ready(random_shifts_aug(x, shift2, pad))
    ref2 = _reference(x, np.asarray(shift2), pad)
    np.testing.assert_array_equal(np.asarray(out2), np.asarray(ref2))

    print("KERNEL_OK")
</pallas_src>

<mosaic_0001>
module attributes {stable_mosaic.version = 11 : i64} {
  func.func @_shift_crop_kernel(%arg0: i32, %arg1: memref<2x2xi32, #tpu.memory_space<smem>>, %arg2: memref<2x4x16x16xf32, #tpu.memory_space<vmem>>, %arg3: memref<2x4x16x16xf32, #tpu.memory_space<vmem>>, %arg4: memref<4x24x24xf32, #tpu.memory_space<vmem>>) attributes {dimension_semantics = [#tpu.dimension_semantics<parallel>], iteration_bounds = array<i64: 1>, scalar_prefetch = 1 : i64, scratch_operands = 1 : i64, tpu.core_type = #tpu.core_type<tc>, window_params = [{transform_indices = @transform_0, window_bounds = array<i64: 2, 4, 16, 16>}, {transform_indices = @transform_1, window_bounds = array<i64: 2, 4, 16, 16>}]} {
    %c0_i32 = arith.constant 0 : i32
    %c2_i32 = arith.constant 2 : i32
    %0 = arith.addi %c0_i32, %c2_i32 : i32
    %c1_i32 = arith.constant 1 : i32
    scf.for %arg5 = %c0_i32 to %0 step %c1_i32  : i32 {
      %c2_i32_1 = arith.constant 2 : i32
      %1 = arith.muli %arg0, %c2_i32_1 : i32
      %2 = arith.addi %1, %arg5 : i32
      %c2_i32_2 = arith.constant 2 : i32
      %3 = arith.cmpi slt, %2, %c2_i32_2 : i32
      %4 = arith.extui %3 : i1 to i32
      %c0_i32_3 = arith.constant 0 : i32
      %5 = arith.cmpi ne, %4, %c0_i32_3 : i32
      scf.if %5 {
        %c0 = arith.constant 0 : index
        %6 = arith.index_cast %2 : i32 to index
        %7 = memref.load %arg1[%c0, %6] : memref<2x2xi32, #tpu.memory_space<smem>>
        %c1 = arith.constant 1 : index
        %8 = arith.index_cast %2 : i32 to index
        %9 = memref.load %arg1[%c1, %8] : memref<2x2xi32, #tpu.memory_space<smem>>
        %10 = arith.index_cast %arg5 : i32 to index
        %c0_4 = arith.constant 0 : index
        %c0_5 = arith.constant 0 : index
        %c0_6 = arith.constant 0 : index
        %11 = vector.load %arg2[%10, %c0_4, %c0_5, %c0_6] : memref<2x4x16x16xf32, #tpu.memory_space<vmem>>, vector<1x4x16x16xf32>
        %12 = vector.shape_cast %11 : vector<1x4x16x16xf32> to vector<4x16x16xf32>
        %c0_7 = arith.constant 0 : index
        %c4 = arith.constant 4 : index
        %c4_8 = arith.constant 4 : index
        %13 = vector.load %arg4[%c0_7, %c4, %c4_8] : memref<4x24x24xf32, #tpu.memory_space<vmem>>, vector<4x16x16xf32>
        tpu.vector_store %arg4[%c0_7, %c4, %c4_8], %12 {strides = array<i32>} : memref<4x24x24xf32, #tpu.memory_space<vmem>>, vector<4x16x16xf32>,
        %c0_9 = arith.constant 0 : index
        %c4_10 = arith.constant 4 : index
        %c4_11 = arith.constant 4 : index
        %14 = vector.load %arg4[%c0_9, %c4_10, %c4_11] : memref<4x24x24xf32, #tpu.memory_space<vmem>>, vector<4x16x1xf32>
        %15 = vector.shape_cast %14 : vector<4x16x1xf32> to vector<4x16x1xf32>
        %16 = vector.broadcast %15 : vector<4x16x1xf32> to vector<4x16x4xf32>
        %c0_12 = arith.constant 0 : index
        %c4_13 = arith.constant 4 : index
        %c0_14 = arith.constant 0 : index
        %17 = vector.load %arg4[%c0_12, %c4_13, %c0_14] : memref<4x24x24xf32, #tpu.memory_space<vmem>>, vector<4x16x4xf32>
        tpu.vector_store %arg4[%c0_12, %c4_13, %c0_14], %16 {strides = array<i32>} : memref<4x24x24xf32, #tpu.memory_space<vmem>>, vector<4x16x4xf32>,
        %c0_15 = arith.constant 0 : index
        %c4_16 = arith.constant 4 : index
        %c19 = arith.constant 19 : index
        %18 = vector.load %arg4[%c0_15, %c4_16, %c19] : memref<4x24x24xf32, #tpu.memory_space<vmem>>, vector<4x16x1xf32>
        %19 = vector.shape_cast %18 : vector<4x16x1xf32> to vector<4x16x1xf32>
        %20 = vector.broadcast %19 : vector<4x16x1xf32> to vector<4x16x4xf32>
        %c0_17 = arith.constant 0 : index
        %c4_18 = arith.constant 4 : index
        %c20 = arith.constant 20 : index
        %21 = vector.load %arg4[%c0_17, %c4_18, %c20] : memref<4x24x24xf32, #tpu.memory_space<vmem>>, vector<4x16x4xf32>
        tpu.vector_store %arg4[%c0_17, %c4_18, %c20], %20 {strides = array<i32>} : memref<4x24x24xf32, #tpu.memory_space<vmem>>, vector<4x16x4xf32>,
        %c0_19 = arith.constant 0 : index
        %c4_20 = arith.constant 4 : index
        %c0_21 = arith.constant 0 : index
        %22 = vector.load %arg4[%c0_19, %c4_20, %c0_21] : memref<4x24x24xf32, #tpu.memory_space<vmem>>, vector<4x1x24xf32>
        %23 = vector.shape_cast %22 : vector<4x1x24xf32> to vector<4x1x24xf32>
        %24 = vector.broadcast %23 : vector<4x1x24xf32> to vector<4x4x24xf32>
        %c0_22 = arith.constant 0 : index
        %c0_23 = arith.constant 0 : index
        %c0_24 = arith.constant 0 : index
        %25 = vector.load %arg4[%c0_22, %c0_23, %c0_24] : memref<4x24x24xf32, #tpu.memory_space<vmem>>, vector<4x4x24xf32>
        tpu.vector_store %arg4[%c0_22, %c0_23, %c0_24], %24 {strides = array<i32>} : memref<4x24x24xf32, #tpu.memory_space<vmem>>, vector<4x4x24xf32>,
        %c0_25 = arith.constant 0 : index
        %c19_26 = arith.constant 19 : index
        %c0_27 = arith.constant 0 : index
        %26 = vector.load %arg4[%c0_25, %c19_26, %c0_27] : memref<4x24x24xf32, #tpu.memory_space<vmem>>, vector<4x1x24xf32>
        %27 = vector.shape_cast %26 : vector<4x1x24xf32> to vector<4x1x24xf32>
        %28 = vector.broadcast %27 : vector<4x1x24xf32> to vector<4x4x24xf32>
        %c0_28 = arith.constant 0 : index
        %c20_29 = arith.constant 20 : index
        %c0_30 = arith.constant 0 : index
        %29 = vector.load %arg4[%c0_28, %c20_29, %c0_30] : memref<4x24x24xf32, #tpu.memory_space<vmem>>, vector<4x4x24xf32>
        tpu.vector_store %arg4[%c0_28, %c20_29, %c0_30], %28 {strides = array<i32>} : memref<4x24x24xf32, #tpu.memory_space<vmem>>, vector<4x4x24xf32>,
        %c0_i32_31 = arith.constant 0 : i32
        %30 = arith.cmpi eq, %7, %c0_i32_31 : i32
        %31 = arith.extui %30 : i1 to i32
        %c0_i32_32 = arith.constant 0 : i32
        %32 = arith.cmpi ne, %31, %c0_i32_32 : i32
        scf.if %32 {
          %c0_43 = arith.constant 0 : index
          %57 = arith.index_cast %9 : i32 to index
          %c0_44 = arith.constant 0 : index
          %58 = vector.load %arg4[%c0_43, %57, %c0_44] : memref<4x24x24xf32, #tpu.memory_space<vmem>>, vector<4x16x16xf32>
          %59 = arith.index_cast %arg5 : i32 to index
          %c0_45 = arith.constant 0 : index
          %c0_46 = arith.constant 0 : index
          %c0_47 = arith.constant 0 : index
          %60 = vector.load %arg3[%59, %c0_45, %c0_46, %c0_47] : memref<2x4x16x16xf32, #tpu.memory_space<vmem>>, vector<1x4x16x16xf32>
          %61 = vector.shape_cast %60 : vector<1x4x16x16xf32> to vector<4x16x16xf32>
          %62 = vector.shape_cast %58 : vector<4x16x16xf32> to vector<1x4x16x16xf32>
          tpu.vector_store %arg3[%59, %c0_45, %c0_46, %c0_47], %62 {strides = array<i32>} : memref<2x4x16x16xf32, #tpu.memory_space<vmem>>, vector<1x4x16x16xf32>,
        } else {
        }
        %c1_i32_33 = arith.constant 1 : i32
        %33 = arith.cmpi eq, %7, %c1_i32_33 : i32
        %34 = arith.extui %33 : i1 to i32
        %c0_i32_34 = arith.constant 0 : i32
        %35 = arith.cmpi ne, %34, %c0_i32_34 : i32
        scf.if %35 {
          %c0_43 = arith.constant 0 : index
          %57 = arith.index_cast %9 : i32 to index
          %c1_44 = arith.constant 1 : index
          %58 = vector.load %arg4[%c0_43, %57, %c1_44] : memref<4x24x24xf32, #tpu.memory_space<vmem>>, vector<4x16x16xf32>
          %59 = arith.index_cast %arg5 : i32 to index
          %c0_45 = arith.constant 0 : index
          %c0_46 = arith.constant 0 : index
          %c0_47 = arith.constant 0 : index
          %60 = vector.load %arg3[%59, %c0_45, %c0_46, %c0_47] : memref<2x4x16x16xf32, #tpu.memory_space<vmem>>, vector<1x4x16x16xf32>
          %61 = vector.shape_cast %60 : vector<1x4x16x16xf32> to vector<4x16x16xf32>
          %62 = vector.shape_cast %58 : vector<4x16x16xf32> to vector<1x4x16x16xf32>
          tpu.vector_store %arg3[%59, %c0_45, %c0_46, %c0_47], %62 {strides = array<i32>} : memref<2x4x16x16xf32, #tpu.memory_space<vmem>>, vector<1x4x16x16xf32>,
        } else {
        }
        %c2_i32_35 = arith.constant 2 : i32
        %36 = arith.cmpi eq, %7, %c2_i32_35 : i32
        %37 = arith.extui %36 : i1 to i32
        %c0_i32_36 = arith.constant 0 : i32
        %38 = arith.cmpi ne, %37, %c0_i32_36 : i32
        scf.if %38 {
          %c0_43 = arith.constant 0 : index
          %57 = arith.index_cast %9 : i32 to index
          %c2 = arith.constant 2 : index
          %58 = vector.load %arg4[%c0_43, %57, %c2] : memref<4x24x24xf32, #tpu.memory_space<vmem>>, vector<4x16x16xf32>
          %59 = arith.index_cast %arg5 : i32 to index
          %c0_44 = arith.constant 0 : index
          %c0_45 = arith.constant 0 : index
          %c0_46 = arith.constant 0 : index
          %60 = vector.load %arg3[%59, %c0_44, %c0_45, %c0_46] : memref<2x4x16x16xf32, #tpu.memory_space<vmem>>, vector<1x4x16x16xf32>
          %61 = vector.shape_cast %60 : vector<1x4x16x16xf32> to vector<4x16x16xf32>
          %62 = vector.shape_cast %58 : vector<4x16x16xf32> to vector<1x4x16x16xf32>
          tpu.vector_store %arg3[%59, %c0_44, %c0_45, %c0_46], %62 {strides = array<i32>} : memref<2x4x16x16xf32, #tpu.memory_space<vmem>>, vector<1x4x16x16xf32>,
        } else {
        }
        %c3_i32 = arith.constant 3 : i32
        %39 = arith.cmpi eq, %7, %c3_i32 : i32
        %40 = arith.extui %39 : i1 to i32
        %c0_i32_37 = arith.constant 0 : i32
        %41 = arith.cmpi ne, %40, %c0_i32_37 : i32
        scf.if %41 {
          %c0_43 = arith.constant 0 : index
          %57 = arith.index_cast %9 : i32 to index
          %c3 = arith.constant 3 : index
          %58 = vector.load %arg4[%c0_43, %57, %c3] : memref<4x24x24xf32, #tpu.memory_space<vmem>>, vector<4x16x16xf32>
          %59 = arith.index_cast %arg5 : i32 to index
          %c0_44 = arith.constant 0 : index
          %c0_45 = arith.constant 0 : index
          %c0_46 = arith.constant 0 : index
          %60 = vector.load %arg3[%59, %c0_44, %c0_45, %c0_46] : memref<2x4x16x16xf32, #tpu.memory_space<vmem>>, vector<1x4x16x16xf32>
          %61 = vector.shape_cast %60 : vector<1x4x16x16xf32> to vector<4x16x16xf32>
          %62 = vector.shape_cast %58 : vector<4x16x16xf32> to vector<1x4x16x16xf32>
          tpu.vector_store %arg3[%59, %c0_44, %c0_45, %c0_46], %62 {strides = array<i32>} : memref<2x4x16x16xf32, #tpu.memory_space<vmem>>, vector<1x4x16x16xf32>,
        } else {
        }
        %c4_i32 = arith.constant 4 : i32
        %42 = arith.cmpi eq, %7, %c4_i32 : i32
        %43 = arith.extui %42 : i1 to i32
        %c0_i32_38 = arith.constant 0 : i32
        %44 = arith.cmpi ne, %43, %c0_i32_38 : i32
        scf.if %44 {
          %c0_43 = arith.constant 0 : index
          %57 = arith.index_cast %9 : i32 to index
          %c4_44 = arith.constant 4 : index
          %58 = vector.load %arg4[%c0_43, %57, %c4_44] : memref<4x24x24xf32, #tpu.memory_space<vmem>>, vector<4x16x16xf32>
          %59 = arith.index_cast %arg5 : i32 to index
          %c0_45 = arith.constant 0 : index
          %c0_46 = arith.constant 0 : index
          %c0_47 = arith.constant 0 : index
          %60 = vector.load %arg3[%59, %c0_45, %c0_46, %c0_47] : memref<2x4x16x16xf32, #tpu.memory_space<vmem>>, vector<1x4x16x16xf32>
          %61 = vector.shape_cast %60 : vector<1x4x16x16xf32> to vector<4x16x16xf32>
          %62 = vector.shape_cast %58 : vector<4x16x16xf32> to vector<1x4x16x16xf32>
          tpu.vector_store %arg3[%59, %c0_45, %c0_46, %c0_47], %62 {strides = array<i32>} : memref<2x4x16x16xf32, #tpu.memory_space<vmem>>, vector<1x4x16x16xf32>,
        } else {
        }
        %c5_i32 = arith.constant 5 : i32
        %45 = arith.cmpi eq, %7, %c5_i32 : i32
        %46 = arith.extui %45 : i1 to i32
        %c0_i32_39 = arith.constant 0 : i32
        %47 = arith.cmpi ne, %46, %c0_i32_39 : i32
        scf.if %47 {
          %c0_43 = arith.constant 0 : index
          %57 = arith.index_cast %9 : i32 to index
          %c5 = arith.constant 5 : index
          %58 = vector.load %arg4[%c0_43, %57, %c5] : memref<4x24x24xf32, #tpu.memory_space<vmem>>, vector<4x16x16xf32>
          %59 = arith.index_cast %arg5 : i32 to index
          %c0_44 = arith.constant 0 : index
          %c0_45 = arith.constant 0 : index
          %c0_46 = arith.constant 0 : index
          %60 = vector.load %arg3[%59, %c0_44, %c0_45, %c0_46] : memref<2x4x16x16xf32, #tpu.memory_space<vmem>>, vector<1x4x16x16xf32>
          %61 = vector.shape_cast %60 : vector<1x4x16x16xf32> to vector<4x16x16xf32>
          %62 = vector.shape_cast %58 : vector<4x16x16xf32> to vector<1x4x16x16xf32>
          tpu.vector_store %arg3[%59, %c0_44, %c0_45, %c0_46], %62 {strides = array<i32>} : memref<2x4x16x16xf32, #tpu.memory_space<vmem>>, vector<1x4x16x16xf32>,
        } else {
        }
        %c6_i32 = arith.constant 6 : i32
        %48 = arith.cmpi eq, %7, %c6_i32 : i32
        %49 = arith.extui %48 : i1 to i32
        %c0_i32_40 = arith.constant 0 : i32
        %50 = arith.cmpi ne, %49, %c0_i32_40 : i32
        scf.if %50 {
          %c0_43 = arith.constant 0 : index
          %57 = arith.index_cast %9 : i32 to index
          %c6 = arith.constant 6 : index
          %58 = vector.load %arg4[%c0_43, %57, %c6] : memref<4x24x24xf32, #tpu.memory_space<vmem>>, vector<4x16x16xf32>
          %59 = arith.index_cast %arg5 : i32 to index
          %c0_44 = arith.constant 0 : index
          %c0_45 = arith.constant 0 : index
          %c0_46 = arith.constant 0 : index
          %60 = vector.load %arg3[%59, %c0_44, %c0_45, %c0_46] : memref<2x4x16x16xf32, #tpu.memory_space<vmem>>, vector<1x4x16x16xf32>
          %61 = vector.shape_cast %60 : vector<1x4x16x16xf32> to vector<4x16x16xf32>
          %62 = vector.shape_cast %58 : vector<4x16x16xf32> to vector<1x4x16x16xf32>
          tpu.vector_store %arg3[%59, %c0_44, %c0_45, %c0_46], %62 {strides = array<i32>} : memref<2x4x16x16xf32, #tpu.memory_space<vmem>>, vector<1x4x16x16xf32>,
        } else {
        }
        %c7_i32 = arith.constant 7 : i32
        %51 = arith.cmpi eq, %7, %c7_i32 : i32
        %52 = arith.extui %51 : i1 to i32
        %c0_i32_41 = arith.constant 0 : i32
        %53 = arith.cmpi ne, %52, %c0_i32_41 : i32
        scf.if %53 {
          %c0_43 = arith.constant 0 : index
          %57 = arith.index_cast %9 : i32 to index
          %c7 = arith.constant 7 : index
          %58 = vector.load %arg4[%c0_43, %57, %c7] : memref<4x24x24xf32, #tpu.memory_space<vmem>>, vector<4x16x16xf32>
          %59 = arith.index_cast %arg5 : i32 to index
          %c0_44 = arith.constant 0 : index
          %c0_45 = arith.constant 0 : index
          %c0_46 = arith.constant 0 : index
          %60 = vector.load %arg3[%59, %c0_44, %c0_45, %c0_46] : memref<2x4x16x16xf32, #tpu.memory_space<vmem>>, vector<1x4x16x16xf32>
          %61 = vector.shape_cast %60 : vector<1x4x16x16xf32> to vector<4x16x16xf32>
          %62 = vector.shape_cast %58 : vector<4x16x16xf32> to vector<1x4x16x16xf32>
          tpu.vector_store %arg3[%59, %c0_44, %c0_45, %c0_46], %62 {strides = array<i32>} : memref<2x4x16x16xf32, #tpu.memory_space<vmem>>, vector<1x4x16x16xf32>,
        } else {
        }
        %c8_i32 = arith.constant 8 : i32
        %54 = arith.cmpi eq, %7, %c8_i32 : i32
        %55 = arith.extui %54 : i1 to i32
        %c0_i32_42 = arith.constant 0 : i32
        %56 = arith.cmpi ne, %55, %c0_i32_42 : i32
        scf.if %56 {
          %c0_43 = arith.constant 0 : index
          %57 = arith.index_cast %9 : i32 to index
          %c8 = arith.constant 8 : index
          %58 = vector.load %arg4[%c0_43, %57, %c8] : memref<4x24x24xf32, #tpu.memory_space<vmem>>, vector<4x16x16xf32>
          %59 = arith.index_cast %arg5 : i32 to index
          %c0_44 = arith.constant 0 : index
          %c0_45 = arith.constant 0 : index
          %c0_46 = arith.constant 0 : index
          %60 = vector.load %arg3[%59, %c0_44, %c0_45, %c0_46] : memref<2x4x16x16xf32, #tpu.memory_space<vmem>>, vector<1x4x16x16xf32>
          %61 = vector.shape_cast %60 : vector<1x4x16x16xf32> to vector<4x16x16xf32>
          %62 = vector.shape_cast %58 : vector<4x16x16xf32> to vector<1x4x16x16xf32>
          tpu.vector_store %arg3[%59, %c0_44, %c0_45, %c0_46], %62 {strides = array<i32>} : memref<2x4x16x16xf32, #tpu.memory_space<vmem>>, vector<1x4x16x16xf32>,
        } else {
        }
      } else {
      }
    }
    %c2_i32_0 = arith.constant 2 : i32
    return
  }
  func.func @transform_0(%arg0: i32, %arg1: memref<2x2xi32, #tpu.memory_space<smem>>) -> (i32, i32, i32, i32) {
    %c0_i32 = arith.constant 0 : i32
    %c0_i32_0 = arith.constant 0 : i32
    %c0_i32_1 = arith.constant 0 : i32
    %c0_i32_2 = arith.constant 0 : i32
    return %arg0, %c0_i32, %c0_i32_0, %c0_i32_1 : i32, i32, i32, i32
  }
  func.func @transform_1(%arg0: i32, %arg1: memref<2x2xi32, #tpu.memory_space<smem>>) -> (i32, i32, i32, i32) {
    %c0_i32 = arith.constant 0 : i32
    %c0_i32_0 = arith.constant 0 : i32
    %c0_i32_1 = arith.constant 0 : i32
    %c0_i32_2 = arith.constant 0 : i32
    return %arg0, %c0_i32, %c0_i32_0, %c0_i32_1 : i32, i32, i32, i32
  }
}

</mosaic_0001>

<bundles_post_ra>
// kernel: tpu_custom_call.1
= control target key start
LH: loop header
LB: loop body
LE: loop exit
PB: predicated region body
PF: predicated region fallthrough
CT: control target
= control target key end

     0   :  { %s889_s9 = smov [#allocation4]   ;;  %s1086_s0 = inlined_call_operand.hbm [shape: s32[2,2], index: 0, kind: input, shape index: {}]   ;;  %s1087_s1 = inlined_call_operand.hbm [shape: f32[2,4,16,16], index: 1, kind: input, shape index: {}]   ;;  %s1088_s2 = inlined_call_operand.hbm [shape: f32[2,4,16,16], index: 2, kind: output, shape index: {}]  }
   0x1   :  { %8 = dma.hbm_to_smem %s1086_s0, 32, %s889_s9, [#allocation3] }
   0x2   :  { %879 = dma.done.wait [#allocation3], 32 }
   0x3   :  { %880 = vsyncadd [#allocation3], 4294967264 }
   0x4   :  { %10 = sfence }
   0x5   :  { %11 = vsyncpa [#allocation6], 0 }
   0x6   :  { %12 = vsyncpa [#allocation7], 0  ;;  %s890_s12 = smov [#allocation5]  }
   0x7   :  { %s18_s13 = sshll.u32 %s890_s12, 4  ;;  %s19_s13 = int_to_ptr.vmem [resolvable:$true] %s18_s13 }
   0x8   :  { %s843_s14 = scalar_lea.vmem %s19_s13, 2048  ;;  %p848_p1 = scmp.lt.s32.totalorder %s19_s13, %s19_s13 }
   0x9   :  { %p844_p0 = scmp.ne.s32.totalorder %s19_s13, %s843_s14  ;;  %p849_p2 = scmp.lt.s32.totalorder %s843_s14, %s843_s14 }
   0xb   :  { %p850_p3 = por %p849_p2, %p848_p1 }
   0xd   :  { %p851_p4 = pnand %p850_p3, %p844_p0 }
   0xf   :  { %854 = shalt.err (!%p851_p4)
}
  0x10   :  { %s891_s15 = smov 128   ;;  %s892_s16 = smov 8  }
  0x11   :  { %24 = dma.hbm_to_vmem [thread:$0]  %s1087_s1, 2048, %s19_s13, [#allocation6], %s891_s15, %s891_s15, %s892_s16  }
  0x12   :  { %881 = dma.done.wait [#allocation6], 2048  }
  0x13   :  { %882 = vsyncadd [#allocation6], 4294965248  ;;  %s929_s18 = smov 0  }
  0x14 LB: > { %p777_p5 = scmp.ge.s32.totalorder %s887_s18, 2  ;;  %s887_s18 = sphi %s929_s18, %s33_s18  }
  0x15   : > { %s936_s19 = sshll.u32 (!%p777_p5), %s887_s18, 6  ;;  %s894_s20 = smov (!%p777_p5), 4  }
  0x16   : > { %39 = sbr.rel (%p777_p5) target bundleno = 1536 (0x600), region = 20  ;;  %s50_s1 = scalar_lea.vmem (!%p777_p5), [#allocation5], %s936_s19 }
  0x17   : > { %s41_s21 = sshra.s32 (!%p777_p5), %s887_s18, 7  ;;  %s46_s24 = sand.u32 (!%p777_p5), 127, %s887_s18 }
  0x18   : > { %s797_s22 = sshll.u32 (!%p777_p5), %s41_s21, 7  ;;  %s958_s26 = sld [smem:[#allocation4 + %s887_s18]] (!%p777_p5) }
  0x19   : > { %s798_s23 = sadd.s32 (!%p777_p5), 128, %s797_s22 }
  0x1a   : > { %s47_s25 = sadd.s32 (!%p777_p5), %s798_s23, %s46_s24 }
  0x1b   : > { %v893_v0 = vmov 4   ;;  %v53_v1 = vld [vmem:[%s50_s1 + $0x10] sm:$0xff]  ;;  %v51_v2 = vld [vmem:[%s50_s1] sm:$0xff]  ;;  %v54_v3 = vld [vmem:[%s50_s1 + $0x18] sm:$0xff]  ;;  %vm91_vm0 = vcmask 162848   ;;  %v895_v25 = vmov 19  }
  0x1c   : > { %823 = vset.pattern.permute.xlu0 %v893_v0  ;;  %824 = vset.pattern.permute.xlu1 %v893_v0  ;;  %v52_v4 = vld [vmem:[%s50_s1 + $0x8] sm:$0xff]  ;;  %v55_v6 = vld [vmem:[%s50_s1 + $0x20] sm:$0xff]  ;;  %v58_v7 = vld [vmem:[%s50_s1 + $0x38] sm:$0xff]  ;;  %vm148_vm1 = vcmask 31744   ;;  %s960_s27 = sld [smem:[#allocation4 + %s47_s25]]  ;;  %vm205_vm2 = vcmask 195744  }
  0x1d   : > { %71 = vrot.lane.b32.xlu1 %v53_v1, %s894_s20  ;;  %67 = vrot.lane.b32.xlu0 %v51_v2, %s894_s20  ;;  %v56_v5 = vld [vmem:[%s50_s1 + $0x28] sm:$0xff]  ;;  %v57_v8 = vld [vmem:[%s50_s1 + $0x30] sm:$0xff]  ;;  %vm234_vm3 = vcmask 191488  }
  0x1e   : > { %p788_p6 = scmp.ne.s32.totalorder %s958_s26, 0 }
  0x1f   : > { %s276_s29 = scalar_lea.vmem (!%p788_p6), [#allocation8], %s936_s19 }
  0x21   : > { %73 = vrot.lane.b32.xlu1 %v54_v3, %s894_s20  ;;  %69 = vrot.lane.b32.xlu0 %v52_v4, %s894_s20 }
  0x22   : > { %s267_s28 = scalar_lea.vmem (!%p788_p6), [#allocation2], %s960_s27 }
  0x25   : > { %77 = vrot.lane.b32.xlu1 %v56_v5, %s894_s20  ;;  %75 = vrot.lane.b32.xlu0 %v55_v6, %s894_s20 }
  0x29   : > { %81 = vrot.lane.b32.xlu1 %v58_v7, %s894_s20  ;;  %79 = vrot.lane.b32.xlu0 %v57_v8, %s894_s20 }
  0x8f   : > { %v72_v9 = vpop.permute.xlu1 %71  ;;  %v68_v10 = vpop.permute.xlu0 %67 }
  0x90   : > { %94 = vst.msk [vmem:[#allocation2 + $0x1c] sm:$0xff] %vm91_vm0, %v72_v9  ;;  %92 = vst.msk [vmem:[#allocation2 + $0x4] sm:$0xff] %vm91_vm0, %v68_v10 }
  0x93   : > { %v74_v11 = vpop.permute.xlu1 %73  ;;  %v70_v12 = vpop.permute.xlu0 %69 }
  0x94   : > { %95 = vst.msk [vmem:[#allocation2 + $0x24] sm:$0xff] %vm91_vm0, %v74_v11  ;;  %93 = vst.msk [vmem:[#allocation2 + $0xc] sm:$0xff] %vm91_vm0, %v70_v12 }
  0x97   : > { %v78_v13 = vpop.permute.xlu1 %77  ;;  %v100_v14 = vld [vmem:[#allocation2 + $0x4] sm:$0xff]  ;;  %v76_v15 = vpop.permute.xlu0 %75  ;;  %v102_v20 = vld [vmem:[#allocation2 + $0x1c] sm:$0xff] }
  0x98   : > { %97 = vst.msk [vmem:[#allocation2 + $0x3c] sm:$0xff] %vm91_vm0, %v78_v13  ;;  %110 = vperm.xlu0 %823, %v100_v14   ;;  %96 = vst.msk [vmem:[#allocation2 + $0x34] sm:$0xff] %vm91_vm0, %v76_v15 }
  0x9b   : > { %v82_v16 = vpop.permute.xlu1 %81  ;;  %v103_v17 = vld [vmem:[#allocation2 + $0x24] sm:$0xff]  ;;  %v101_v18 = vld [vmem:[#allocation2 + $0xc] sm:$0xff]  ;;  %v80_v19 = vpop.permute.xlu0 %79 }
  0x9c   : > { %99 = vst.msk [vmem:[#allocation2 + $0x54] sm:$0xff] %vm91_vm0, %v82_v16  ;;  %125 = vperm.xlu0 %823, %v103_v17   ;;  %115 = vperm.xlu1 %824, %v101_v18   ;;  %98 = vst.msk [vmem:[#allocation2 + $0x4c] sm:$0xff] %vm91_vm0, %v80_v19 }
  0x9f   : > { %v105_v21 = vld [vmem:[#allocation2 + $0x3c] sm:$0xff]  ;;  %v104_v22 = vld [vmem:[#allocation2 + $0x34] sm:$0xff] }
  0xa0   : > { %135 = vperm.xlu0 %823, %v105_v21   ;;  %120 = vperm.xlu1 %824, %v102_v20  }
  0xa3   : > { %v107_v23 = vld [vmem:[#allocation2 + $0x54] sm:$0xff]  ;;  %v106_v24 = vld [vmem:[#allocation2 + $0x4c] sm:$0xff] }
  0xa4   : > { %145 = vperm.xlu0 %823, %v107_v23   ;;  %130 = vperm.xlu1 %824, %v104_v22  }
  0xa8   : > { %140 = vperm.xlu1 %824, %v106_v24   ;;  %826 = vset.pattern.permute.xlu0 %v895_v25 }
  0xac   : > { %825 = vset.pattern.permute.xlu1 %v895_v25 }
 0x113   : > { %v111_v26 = vpop.permute.xlu0 %110 }
 0x114   : > { %149 = vst.msk [vmem:[#allocation2 + $0x4] sm:$0xff] %vm148_vm1, %v111_v26 }
 0x117   : > { %v116_v27 = vpop.permute.xlu1 %115  ;;  %v126_v28 = vpop.permute.xlu0 %125 }
 0x118   : > { %150 = vst.msk [vmem:[#allocation2 + $0xc] sm:$0xff] %vm148_vm1, %v116_v27  ;;  %152 = vst.msk [vmem:[#allocation2 + $0x24] sm:$0xff] %vm148_vm1, %v126_v28 }
 0x11b   : > { %v121_v29 = vpop.permute.xlu1 %120  ;;  %v136_v30 = vpop.permute.xlu0 %135  ;;  %v157_v31 = vld [vmem:[#allocation2 + $0x4] sm:$0xff] }
 0x11c   : > { %151 = vst.msk [vmem:[#allocation2 + $0x1c] sm:$0xff] %vm148_vm1, %v121_v29  ;;  %154 = vst.msk [vmem:[#allocation2 + $0x3c] sm:$0xff] %vm148_vm1, %v136_v30  ;;  %167 = vperm.xlu1 %825, %v157_v31  }
 0x11f   : > { %v131_v32 = vpop.permute.xlu1 %130  ;;  %v146_v33 = vpop.permute.xlu0 %145  ;;  %v158_v34 = vld [vmem:[#allocation2 + $0xc] sm:$0xff]  ;;  %v160_v38 = vld [vmem:[#allocation2 + $0x24] sm:$0xff] }
 0x120   : > { %153 = vst.msk [vmem:[#allocation2 + $0x34] sm:$0xff] %vm148_vm1, %v131_v32  ;;  %156 = vst.msk [vmem:[#allocation2 + $0x54] sm:$0xff] %vm148_vm1, %v146_v33  ;;  %172 = vperm.xlu0 %826, %v158_v34  }
 0x123   : > { %v141_v35 = vpop.permute.xlu1 %140  ;;  %v159_v36 = vld [vmem:[#allocation2 + $0x1c] sm:$0xff] }
 0x124   : > { %155 = vst.msk [vmem:[#allocation2 + $0x4c] sm:$0xff] %vm148_vm1, %v141_v35  ;;  %177 = vperm.xlu1 %825, %v159_v36   ;;  %v162_v40 = vld [vmem:[#allocation2 + $0x3c] sm:$0xff] }
 0x127   : > { %v161_v37 = vld [vmem:[#allocation2 + $0x34] sm:$0xff] }
 0x128   : > { %187 = vperm.xlu0 %826, %v161_v37   ;;  %182 = vperm.xlu1 %825, %v160_v38   ;;  %v164_v41 = vld [vmem:[#allocation2 + $0x54] sm:$0xff] }
 0x12b   : > { %v163_v39 = vld [vmem:[#allocation2 + $0x4c] sm:$0xff] }
 0x12c   : > { %197 = vperm.xlu0 %826, %v163_v39   ;;  %192 = vperm.xlu1 %825, %v162_v40  }
 0x130   : > { %202 = vperm.xlu1 %825, %v164_v41  }
 0x197   : > { %v168_v42 = vpop.permute.xlu1 %167 }
 0x198   : > { %206 = vst.msk [vmem:[#allocation2 + $0x4] sm:$0xff] %vm205_vm2, %v168_v42 }
 0x19b   : > { %v173_v43 = vpop.permute.xlu0 %172 }
 0x19c   : > { %207 = vst.msk [vmem:[#allocation2 + $0xc] sm:$0xff] %vm205_vm2, %v173_v43 }
 0x19f   : > { %v780_v44 = vld [vmem:[#allocation2 + $0x4] ss:$0 sm:$0xff]  ;;  %v178_v45 = vpop.permute.xlu1 %177 }
 0x1a0   : > { %235 = vst.msk [vmem:[#allocation2] sm:$0xf] %vm234_vm3, %v780_v44 }
 0x1a1   : > { %208 = vst.msk [vmem:[#allocation2 + $0x1c] sm:$0xff] %vm205_vm2, %v178_v45 }
 0x1a3   : > { %v784_v46 = vld [vmem:[#allocation2 + $0x13] ss:$0 sm:$0xff]  ;;  %v183_v47 = vpop.permute.xlu1 %182  ;;  %v188_v48 = vpop.permute.xlu0 %187 }
 0x1a4   : > { %259 = vst.msk [vmem:[#allocation2 + $0x14] sm:$0xf] %vm234_vm3, %v784_v46 }
 0x1a5   : > { %209 = vst.msk [vmem:[#allocation2 + $0x24] sm:$0xff] %vm205_vm2, %v183_v47  ;;  %210 = vst.msk [vmem:[#allocation2 + $0x34] sm:$0xff] %vm205_vm2, %v188_v48 }
 0x1a7   : > { %v193_v50 = vpop.permute.xlu1 %192  ;;  %v198_v51 = vpop.permute.xlu0 %197 }
 0x1a8   : > { %v781_v49 = vld [vmem:[#allocation2 + $0x1c] ss:$0 sm:$0xff]  ;;  %211 = vst.msk [vmem:[#allocation2 + $0x3c] sm:$0xff] %vm205_vm2, %v193_v50  ;;  %212 = vst.msk [vmem:[#allocation2 + $0x4c] sm:$0xff] %vm205_vm2, %v198_v51 }
 0x1a9   : > { %236 = vst.msk [vmem:[#allocation2 + $0x18] sm:$0xf] %vm234_vm3, %v781_v49 }
 0x1ab   : > { %v203_v54 = vpop.permute.xlu1 %202 }
 0x1ac   : > { %v785_v52 = vld [vmem:[#allocation2 + $0x2b] ss:$0 sm:$0xff]  ;;  %v782_v53 = vld [vmem:[#allocation2 + $0x34] ss:$0 sm:$0xff]  ;;  %213 = vst.msk [vmem:[#allocation2 + $0x54] sm:$0xff] %vm205_vm2, %v203_v54 }
 0x1ad   : > { %260 = vst.msk [vmem:[#allocation2 + $0x2c] sm:$0xf] %vm234_vm3, %v785_v52  ;;  %237 = vst.msk [vmem:[#allocation2 + $0x30] sm:$0xf] %vm234_vm3, %v782_v53 }
 0x1af   : > { %v786_v55 = vld [vmem:[#allocation2 + $0x43] ss:$0 sm:$0xff]  ;;  %v783_v56 = vld [vmem:[#allocation2 + $0x4c] ss:$0 sm:$0xff] }
 0x1b0   : > { %261 = vst.msk [vmem:[#allocation2 + $0x44] sm:$0xf] %vm234_vm3, %v786_v55  ;;  %238 = vst.msk [vmem:[#allocation2 + $0x48] sm:$0xf] %vm234_vm3, %v783_v56  ;;  %266 = sbr.rel (%p788_p6) target bundleno = 448 (0x1c0), region = 24 }
 0x1b3   : > { %v787_v57 = vld [vmem:[#allocation2 + $0x5b] ss:$0 sm:$0xff] }
 0x1b4   : > { %262 = vst.msk [vmem:[#allocation2 + $0x5c] sm:$0xf] %vm234_vm3, %v787_v57 }
 0x1b5   : > { %vm277_vm4 = vcmask 130048  }
 0x1bb   : > { %v268_v58 = vld [vmem:[%s267_s28] sm:$0xff]  ;;  %v269_v59 = vld [vmem:[%s267_s28 + $0x8] sm:$0xff]  ;;  %v270_v60 = vld [vmem:[%s267_s28 + $0x18] sm:$0xff] }
 0x1bc   : > { %278 = vst.msk [vmem:[%s276_s29] sm:$0xff] %vm277_vm4, %v268_v58  ;;  %279 = vst.msk [vmem:[%s276_s29 + $0x8] sm:$0xff] %vm277_vm4, %v269_v59  ;;  %v271_v61 = vld [vmem:[%s267_s28 + $0x20] sm:$0xff]  ;;  %v272_v62 = vld [vmem:[%s267_s28 + $0x30] sm:$0xff] }
 0x1bd   : > { %280 = vst.msk [vmem:[%s276_s29 + $0x10] sm:$0xff] %vm277_vm4, %v270_v60  ;;  %v273_v63 = vld [vmem:[%s267_s28 + $0x38] sm:$0xff]  ;;  %281 = vst.msk [vmem:[%s276_s29 + $0x18] sm:$0xff] %vm277_vm4, %v271_v61  ;;  %v274_v0 = vld [vmem:[%s267_s28 + $0x48] sm:$0xff] }
 0x1be   : > { %282 = vst.msk [vmem:[%s276_s29 + $0x20] sm:$0xff] %vm277_vm4, %v272_v62  ;;  %283 = vst.msk [vmem:[%s276_s29 + $0x28] sm:$0xff] %vm277_vm4, %v273_v63  ;;  %v275_v1 = vld [vmem:[%s267_s28 + $0x50] sm:$0xff] }
 0x1bf   : > { %284 = vst.msk [vmem:[%s276_s29 + $0x30] sm:$0xff] %vm277_vm4, %v274_v0  ;;  %285 = vst.msk [vmem:[%s276_s29 + $0x38] sm:$0xff] %vm277_vm4, %v275_v1 }
 0x1c0 PF: > { %p789_p7 = scmp.ne.s32.totalorder %s958_s26, 1 }
 0x1c1   : > { %s290_s30 = scalar_lea.vmem (!%p789_p7), [#allocation2], %s960_s27  ;;  %s896_s3 = smov (!%p789_p7), 127  }
 0x1c2   : > { %289 = sbr.rel (%p789_p7) target bundleno = 584 (0x248), region = 28  ;;  %s331_s4 = scalar_lea.vmem (!%p789_p7), [#allocation8], %s936_s19 }
 0x1c7   : > { %v293_v2 = vld [vmem:[%s290_s30 + $0x18] sm:$0xff]  ;;  %v291_v3 = vld [vmem:[%s290_s30] sm:$0xff]  ;;  %v292_v5 = vld [vmem:[%s290_s30 + $0x8] sm:$0xff]  ;;  %vm332_vm5 = vcmask 130048  }
 0x1c8   : > { %311 = vrot.lane.b32.xlu1 %v293_v2, %s896_s3  ;;  %307 = vrot.lane.b32.xlu0 %v291_v3, %s896_s3  ;;  %v294_v4 = vld [vmem:[%s290_s30 + $0x20] sm:$0xff]  ;;  %v296_v6 = vld [vmem:[%s290_s30 + $0x38] sm:$0xff] }
 0x1c9   : > { %v295_v7 = vld [vmem:[%s290_s30 + $0x30] sm:$0xff]  ;;  %v297_v9 = vld [vmem:[%s290_s30 + $0x48] sm:$0xff] }
 0x1ca   : > { %v298_v8 = vld [vmem:[%s290_s30 + $0x50] sm:$0xff] }
 0x1cc   : > { %313 = vrot.lane.b32.xlu1 %v294_v4, %s896_s3  ;;  %309 = vrot.lane.b32.xlu0 %v292_v5, %s896_s3 }
 0x1d0   : > { %317 = vrot.lane.b32.xlu1 %v296_v6, %s896_s3  ;;  %315 = vrot.lane.b32.xlu0 %v295_v7, %s896_s3 }
 0x1d4   : > { %321 = vrot.lane.b32.xlu1 %v298_v8, %s896_s3  ;;  %319 = vrot.lane.b32.xlu0 %v297_v9, %s896_s3 }
 0x23a   : > { %v312_v10 = vpop.permute.xlu1 %311  ;;  %v308_v11 = vpop.permute.xlu0 %307 }
 0x23b   : > { %335 = vst.msk [vmem:[%s331_s4 + $0x10] sm:$0xff] %vm332_vm5, %v312_v10  ;;  %333 = vst.msk [vmem:[%s331_s4] sm:$0xff] %vm332_vm5, %v308_v11 }
 0x23e   : > { %v314_v12 = vpop.permute.xlu1 %313  ;;  %v310_v13 = vpop.permute.xlu0 %309 }
 0x23f   : > { %336 = vst.msk [vmem:[%s331_s4 + $0x18] sm:$0xff] %vm332_vm5, %v314_v12  ;;  %334 = vst.msk [vmem:[%s331_s4 + $0x8] sm:$0xff] %vm332_vm5, %v310_v13 }
 0x242   : > { %v318_v14 = vpop.permute.xlu1 %317  ;;  %v316_v15 = vpop.permute.xlu0 %315 }
 0x243   : > { %338 = vst.msk [vmem:[%s331_s4 + $0x28] sm:$0xff] %vm332_vm5, %v318_v14  ;;  %337 = vst.msk [vmem:[%s331_s4 + $0x20] sm:$0xff] %vm332_vm5, %v316_v15 }
 0x246   : > { %v322_v16 = vpop.permute.xlu1 %321  ;;  %v320_v17 = vpop.permute.xlu0 %319 }
 0x247   : > { %340 = vst.msk [vmem:[%s331_s4 + $0x38] sm:$0xff] %vm332_vm5, %v322_v16  ;;  %339 = vst.msk [vmem:[%s331_s4 + $0x30] sm:$0xff] %vm332_vm5, %v320_v17 }
 0x248 PF: > { %p790_p8 = scmp.ne.s32.totalorder %s958_s26, 2 }
 0x249   : > { %s345_s5 = scalar_lea.vmem (!%p790_p8), [#allocation2], %s960_s27  ;;  %s897_s6 = smov (!%p790_p8), 126  }
 0x24a   : > { %344 = sbr.rel (%p790_p8) target bundleno = 720 (0x2d0), region = 32  ;;  %s386_s7 = scalar_lea.vmem (!%p790_p8), [#allocation8], %s936_s19 }
 0x24f   : > { %v348_v18 = vld [vmem:[%s345_s5 + $0x18] sm:$0xff]  ;;  %v346_v19 = vld [vmem:[%s345_s5] sm:$0xff]  ;;  %v347_v21 = vld [vmem:[%s345_s5 + $0x8] sm:$0xff]  ;;  %vm387_vm6 = vcmask 130048  }
 0x250   : > { %366 = vrot.lane.b32.xlu1 %v348_v18, %s897_s6  ;;  %362 = vrot.lane.b32.xlu0 %v346_v19, %s897_s6  ;;  %v349_v20 = vld [vmem:[%s345_s5 + $0x20] sm:$0xff]  ;;  %v351_v22 = vld [vmem:[%s345_s5 + $0x38] sm:$0xff] }
 0x251   : > { %v350_v23 = vld [vmem:[%s345_s5 + $0x30] sm:$0xff]  ;;  %v352_v25 = vld [vmem:[%s345_s5 + $0x48] sm:$0xff] }
 0x252   : > { %v353_v24 = vld [vmem:[%s345_s5 + $0x50] sm:$0xff] }
 0x254   : > { %368 = vrot.lane.b32.xlu1 %v349_v20, %s897_s6  ;;  %364 = vrot.lane.b32.xlu0 %v347_v21, %s897_s6 }
 0x258   : > { %372 = vrot.lane.b32.xlu1 %v351_v22, %s897_s6  ;;  %370 = vrot.lane.b32.xlu0 %v350_v23, %s897_s6 }
 0x25c   : > { %376 = vrot.lane.b32.xlu1 %v353_v24, %s897_s6  ;;  %374 = vrot.lane.b32.xlu0 %v352_v25, %s897_s6 }
 0x2c2   : > { %v367_v26 = vpop.permute.xlu1 %366  ;;  %v363_v27 = vpop.permute.xlu0 %362 }
 0x2c3   : > { %390 = vst.msk [vmem:[%s386_s7 + $0x10] sm:$0xff] %vm387_vm6, %v367_v26  ;;  %388 = vst.msk [vmem:[%s386_s7] sm:$0xff] %vm387_vm6, %v363_v27 }
 0x2c6   : > { %v369_v28 = vpop.permute.xlu1 %368  ;;  %v365_v29 = vpop.permute.xlu0 %364 }
 0x2c7   : > { %391 = vst.msk [vmem:[%s386_s7 + $0x18] sm:$0xff] %vm387_vm6, %v369_v28  ;;  %389 = vst.msk [vmem:[%s386_s7 + $0x8] sm:$0xff] %vm387_vm6, %v365_v29 }
 0x2ca   : > { %v373_v30 = vpop.permute.xlu1 %372  ;;  %v371_v31 = vpop.permute.xlu0 %370 }
 0x2cb   : > { %393 = vst.msk [vmem:[%s386_s7 + $0x28] sm:$0xff] %vm387_vm6, %v373_v30  ;;  %392 = vst.msk [vmem:[%s386_s7 + $0x20] sm:$0xff] %vm387_vm6, %v371_v31 }
 0x2ce   : > { %v377_v32 = vpop.permute.xlu1 %376  ;;  %v375_v33 = vpop.permute.xlu0 %374 }
 0x2cf   : > { %395 = vst.msk [vmem:[%s386_s7 + $0x38] sm:$0xff] %vm387_vm6, %v377_v32  ;;  %394 = vst.msk [vmem:[%s386_s7 + $0x30] sm:$0xff] %vm387_vm6, %v375_v33 }
 0x2d0 PF: > { %p791_p9 = scmp.ne.s32.totalorder %s958_s26, 3 }
 0x2d1   : > { %s400_s8 = scalar_lea.vmem (!%p791_p9), [#allocation2], %s960_s27  ;;  %s898_s9 = smov (!%p791_p9), 125  }
 0x2d2   : > { %399 = sbr.rel (%p791_p9) target bundleno = 856 (0x358), region = 36  ;;  %s441_s10 = scalar_lea.vmem (!%p791_p9), [#allocation8], %s936_s19 }
 0x2d7   : > { %v403_v34 = vld [vmem:[%s400_s8 + $0x18] sm:$0xff]  ;;  %v401_v35 = vld [vmem:[%s400_s8] sm:$0xff]  ;;  %v402_v37 = vld [vmem:[%s400_s8 + $0x8] sm:$0xff]  ;;  %vm442_vm7 = vcmask 130048  }
 0x2d8   : > { %421 = vrot.lane.b32.xlu1 %v403_v34, %s898_s9  ;;  %417 = vrot.lane.b32.xlu0 %v401_v35, %s898_s9  ;;  %v404_v36 = vld [vmem:[%s400_s8 + $0x20] sm:$0xff]  ;;  %v406_v38 = vld [vmem:[%s400_s8 + $0x38] sm:$0xff] }
 0x2d9   : > { %v405_v39 = vld [vmem:[%s400_s8 + $0x30] sm:$0xff]  ;;  %v407_v41 = vld [vmem:[%s400_s8 + $0x48] sm:$0xff] }
 0x2da   : > { %v408_v40 = vld [vmem:[%s400_s8 + $0x50] sm:$0xff] }
 0x2dc   : > { %423 = vrot.lane.b32.xlu1 %v404_v36, %s898_s9  ;;  %419 = vrot.lane.b32.xlu0 %v402_v37, %s898_s9 }
 0x2e0   : > { %427 = vrot.lane.b32.xlu1 %v406_v38, %s898_s9  ;;  %425 = vrot.lane.b32.xlu0 %v405_v39, %s898_s9 }
 0x2e4   : > { %431 = vrot.lane.b32.xlu1 %v408_v40, %s898_s9  ;;  %429 = vrot.lane.b32.xlu0 %v407_v41, %s898_s9 }
 0x34a   : > { %v422_v42 = vpop.permute.xlu1 %421  ;;  %v418_v43 = vpop.permute.xlu0 %417 }
 0x34b   : > { %445 = vst.msk [vmem:[%s441_s10 + $0x10] sm:$0xff] %vm442_vm7, %v422_v42  ;;  %443 = vst.msk [vmem:[%s441_s10] sm:$0xff] %vm442_vm7, %v418_v43 }
 0x34e   : > { %v424_v44 = vpop.permute.xlu1 %423  ;;  %v420_v45 = vpop.permute.xlu0 %419 }
 0x34f   : > { %446 = vst.msk [vmem:[%s441_s10 + $0x18] sm:$0xff] %vm442_vm7, %v424_v44  ;;  %444 = vst.msk [vmem:[%s441_s10 + $0x8] sm:$0xff] %vm442_vm7, %v420_v45 }
 0x352   : > { %v428_v46 = vpop.permute.xlu1 %427  ;;  %v426_v47 = vpop.permute.xlu0 %425 }
 0x353   : > { %448 = vst.msk [vmem:[%s441_s10 + $0x28] sm:$0xff] %vm442_vm7, %v428_v46  ;;  %447 = vst.msk [vmem:[%s441_s10 + $0x20] sm:$0xff] %vm442_vm7, %v426_v47 }
 0x356   : > { %v432_v48 = vpop.permute.xlu1 %431  ;;  %v430_v49 = vpop.permute.xlu0 %429 }
 0x357   : > { %450 = vst.msk [vmem:[%s441_s10 + $0x38] sm:$0xff] %vm442_vm7, %v432_v48  ;;  %449 = vst.msk [vmem:[%s441_s10 + $0x30] sm:$0xff] %vm442_vm7, %v430_v49 }
 0x358 PF: > { %p792_p10 = scmp.ne.s32.totalorder %s958_s26, 4 }
 0x359   : > { %s455_s11 = scalar_lea.vmem (!%p792_p10), [#allocation2], %s960_s27  ;;  %s899_s12 = smov (!%p792_p10), 124  }
 0x35a   : > { %454 = sbr.rel (%p792_p10) target bundleno = 992 (0x3e0), region = 40  ;;  %s496_s13 = scalar_lea.vmem (!%p792_p10), [#allocation8], %s936_s19 }
 0x35f   : > { %v458_v50 = vld [vmem:[%s455_s11 + $0x18] sm:$0xff]  ;;  %v456_v51 = vld [vmem:[%s455_s11] sm:$0xff]  ;;  %v457_v53 = vld [vmem:[%s455_s11 + $0x8] sm:$0xff]  ;;  %vm497_vm8 = vcmask 130048  }
 0x360   : > { %476 = vrot.lane.b32.xlu1 %v458_v50, %s899_s12  ;;  %472 = vrot.lane.b32.xlu0 %v456_v51, %s899_s12  ;;  %v459_v52 = vld [vmem:[%s455_s11 + $0x20] sm:$0xff]  ;;  %v461_v54 = vld [vmem:[%s455_s11 + $0x38] sm:$0xff] }
 0x361   : > { %v460_v55 = vld [vmem:[%s455_s11 + $0x30] sm:$0xff]  ;;  %v462_v57 = vld [vmem:[%s455_s11 + $0x48] sm:$0xff] }
 0x362   : > { %v463_v56 = vld [vmem:[%s455_s11 + $0x50] sm:$0xff] }
 0x364   : > { %478 = vrot.lane.b32.xlu1 %v459_v52, %s899_s12  ;;  %474 = vrot.lane.b32.xlu0 %v457_v53, %s899_s12 }
 0x368   : > { %482 = vrot.lane.b32.xlu1 %v461_v54, %s899_s12  ;;  %480 = vrot.lane.b32.xlu0 %v460_v55, %s899_s12 }
 0x36c   : > { %486 = vrot.lane.b32.xlu1 %v463_v56, %s899_s12  ;;  %484 = vrot.lane.b32.xlu0 %v462_v57, %s899_s12 }
 0x3d2   : > { %v477_v58 = vpop.permute.xlu1 %476  ;;  %v473_v59 = vpop.permute.xlu0 %472 }
 0x3d3   : > { %500 = vst.msk [vmem:[%s496_s13 + $0x10] sm:$0xff] %vm497_vm8, %v477_v58  ;;  %498 = vst.msk [vmem:[%s496_s13] sm:$0xff] %vm497_vm8, %v473_v59 }
 0x3d6   : > { %v479_v60 = vpop.permute.xlu1 %478  ;;  %v475_v61 = vpop.permute.xlu0 %474 }
 0x3d7   : > { %501 = vst.msk [vmem:[%s496_s13 + $0x18] sm:$0xff] %vm497_vm8, %v479_v60  ;;  %499 = vst.msk [vmem:[%s496_s13 + $0x8] sm:$0xff] %vm497_vm8, %v475_v61 }
 0x3da   : > { %v483_v62 = vpop.permute.xlu1 %482  ;;  %v481_v63 = vpop.permute.xlu0 %480 }
 0x3db   : > { %503 = vst.msk [vmem:[%s496_s13 + $0x28] sm:$0xff] %vm497_vm8, %v483_v62  ;;  %502 = vst.msk [vmem:[%s496_s13 + $0x20] sm:$0xff] %vm497_vm8, %v481_v63 }
 0x3de   : > { %v487_v0 = vpop.permute.xlu1 %486  ;;  %v485_v1 = vpop.permute.xlu0 %484 }
 0x3df   : > { %505 = vst.msk [vmem:[%s496_s13 + $0x38] sm:$0xff] %vm497_vm8, %v487_v0  ;;  %504 = vst.msk [vmem:[%s496_s13 + $0x30] sm:$0xff] %vm497_vm8, %v485_v1 }
 0x3e0 PF: > { %p793_p11 = scmp.ne.s32.totalorder %s958_s26, 5 }
 0x3e1   : > { %s510_s14 = scalar_lea.vmem (!%p793_p11), [#allocation2], %s960_s27  ;;  %s900_s0 = smov (!%p793_p11), 123  }
 0x3e2   : > { %509 = sbr.rel (%p793_p11) target bundleno = 1128 (0x468), region = 44  ;;  %s551_s17 = scalar_lea.vmem (!%p793_p11), [#allocation8], %s936_s19 }
 0x3e7   : > { %v513_v2 = vld [vmem:[%s510_s14 + $0x18] sm:$0xff]  ;;  %v511_v3 = vld [vmem:[%s510_s14] sm:$0xff]  ;;  %v512_v5 = vld [vmem:[%s510_s14 + $0x8] sm:$0xff]  ;;  %vm552_vm9 = vcmask 130048  }
 0x3e8   : > { %531 = vrot.lane.b32.xlu1 %v513_v2, %s900_s0  ;;  %527 = vrot.lane.b32.xlu0 %v511_v3, %s900_s0  ;;  %v514_v4 = vld [vmem:[%s510_s14 + $0x20] sm:$0xff]  ;;  %v516_v6 = vld [vmem:[%s510_s14 + $0x38] sm:$0xff] }
 0x3e9   : > { %v515_v7 = vld [vmem:[%s510_s14 + $0x30] sm:$0xff]  ;;  %v517_v9 = vld [vmem:[%s510_s14 + $0x48] sm:$0xff] }
 0x3ea   : > { %v518_v8 = vld [vmem:[%s510_s14 + $0x50] sm:$0xff] }
 0x3ec   : > { %533 = vrot.lane.b32.xlu1 %v514_v4, %s900_s0  ;;  %529 = vrot.lane.b32.xlu0 %v512_v5, %s900_s0 }
 0x3f0   : > { %537 = vrot.lane.b32.xlu1 %v516_v6, %s900_s0  ;;  %535 = vrot.lane.b32.xlu0 %v515_v7, %s900_s0 }
 0x3f4   : > { %541 = vrot.lane.b32.xlu1 %v518_v8, %s900_s0  ;;  %539 = vrot.lane.b32.xlu0 %v517_v9, %s900_s0 }
 0x45a   : > { %v532_v10 = vpop.permute.xlu1 %531  ;;  %v528_v11 = vpop.permute.xlu0 %527 }
 0x45b   : > { %555 = vst.msk [vmem:[%s551_s17 + $0x10] sm:$0xff] %vm552_vm9, %v532_v10  ;;  %553 = vst.msk [vmem:[%s551_s17] sm:$0xff] %vm552_vm9, %v528_v11 }
 0x45e   : > { %v534_v12 = vpop.permute.xlu1 %533  ;;  %v530_v13 = vpop.permute.xlu0 %529 }
 0x45f   : > { %556 = vst.msk [vmem:[%s551_s17 + $0x18] sm:$0xff] %vm552_vm9, %v534_v12  ;;  %554 = vst.msk [vmem:[%s551_s17 + $0x8] sm:$0xff] %vm552_vm9, %v530_v13 }
 0x462   : > { %v538_v14 = vpop.permute.xlu1 %537  ;;  %v536_v15 = vpop.permute.xlu0 %535 }
 0x463   : > { %558 = vst.msk [vmem:[%s551_s17 + $0x28] sm:$0xff] %vm552_vm9, %v538_v14  ;;  %557 = vst.msk [vmem:[%s551_s17 + $0x20] sm:$0xff] %vm552_vm9, %v536_v15 }
 0x466   : > { %v542_v16 = vpop.permute.xlu1 %541  ;;  %v540_v17 = vpop.permute.xlu0 %539 }
 0x467   : > { %560 = vst.msk [vmem:[%s551_s17 + $0x38] sm:$0xff] %vm552_vm9, %v542_v16  ;;  %559 = vst.msk [vmem:[%s551_s17 + $0x30] sm:$0xff] %vm552_vm9, %v540_v17 }
 0x468 PF: > { %p794_p12 = scmp.ne.s32.totalorder %s958_s26, 6 }
 0x469   : > { %s565_s1 = scalar_lea.vmem (!%p794_p12), [#allocation2], %s960_s27  ;;  %s901_s20 = smov (!%p794_p12), 122  }
 0x46a   : > { %564 = sbr.rel (%p794_p12) target bundleno = 1264 (0x4f0), region = 48  ;;  %s606_s21 = scalar_lea.vmem (!%p794_p12), [#allocation8], %s936_s19 }
 0x46f   : > { %v568_v18 = vld [vmem:[%s565_s1 + $0x18] sm:$0xff]  ;;  %v566_v19 = vld [vmem:[%s565_s1] sm:$0xff]  ;;  %v567_v21 = vld [vmem:[%s565_s1 + $0x8] sm:$0xff]  ;;  %vm607_vm10 = vcmask 130048  }
 0x470   : > { %586 = vrot.lane.b32.xlu1 %v568_v18, %s901_s20  ;;  %582 = vrot.lane.b32.xlu0 %v566_v19, %s901_s20  ;;  %v569_v20 = vld [vmem:[%s565_s1 + $0x20] sm:$0xff]  ;;  %v571_v22 = vld [vmem:[%s565_s1 + $0x38] sm:$0xff] }
 0x471   : > { %v570_v23 = vld [vmem:[%s565_s1 + $0x30] sm:$0xff]  ;;  %v572_v25 = vld [vmem:[%s565_s1 + $0x48] sm:$0xff] }
 0x472   : > { %v573_v24 = vld [vmem:[%s565_s1 + $0x50] sm:$0xff] }
 0x474   : > { %588 = vrot.lane.b32.xlu1 %v569_v20, %s901_s20  ;;  %584 = vrot.lane.b32.xlu0 %v567_v21, %s901_s20 }
 0x478   : > { %592 = vrot.lane.b32.xlu1 %v571_v22, %s901_s20  ;;  %590 = vrot.lane.b32.xlu0 %v570_v23, %s901_s20 }
 0x47c   : > { %596 = vrot.lane.b32.xlu1 %v573_v24, %s901_s20  ;;  %594 = vrot.lane.b32.xlu0 %v572_v25, %s901_s20 }
 0x4e2   : > { %v587_v26 = vpop.permute.xlu1 %586  ;;  %v583_v27 = vpop.permute.xlu0 %582 }
 0x4e3   : > { %610 = vst.msk [vmem:[%s606_s21 + $0x10] sm:$0xff] %vm607_vm10, %v587_v26  ;;  %608 = vst.msk [vmem:[%s606_s21] sm:$0xff] %vm607_vm10, %v583_v27 }
 0x4e6   : > { %v589_v28 = vpop.permute.xlu1 %588  ;;  %v585_v29 = vpop.permute.xlu0 %584 }
 0x4e7   : > { %611 = vst.msk [vmem:[%s606_s21 + $0x18] sm:$0xff] %vm607_vm10, %v589_v28  ;;  %609 = vst.msk [vmem:[%s606_s21 + $0x8] sm:$0xff] %vm607_vm10, %v585_v29 }
 0x4ea   : > { %v593_v30 = vpop.permute.xlu1 %592  ;;  %v591_v31 = vpop.permute.xlu0 %590 }
 0x4eb   : > { %613 = vst.msk [vmem:[%s606_s21 + $0x28] sm:$0xff] %vm607_vm10, %v593_v30  ;;  %612 = vst.msk [vmem:[%s606_s21 + $0x20] sm:$0xff] %vm607_vm10, %v591_v31 }
 0x4ee   : > { %v597_v32 = vpop.permute.xlu1 %596  ;;  %v595_v33 = vpop.permute.xlu0 %594 }
 0x4ef   : > { %615 = vst.msk [vmem:[%s606_s21 + $0x38] sm:$0xff] %vm607_vm10, %v597_v32  ;;  %614 = vst.msk [vmem:[%s606_s21 + $0x30] sm:$0xff] %vm607_vm10, %v595_v33 }
 0x4f0 PF: > { %p795_p13 = scmp.ne.s32.totalorder %s958_s26, 7 }
 0x4f1   : > { %s620_s22 = scalar_lea.vmem (!%p795_p13), [#allocation2], %s960_s27  ;;  %s902_s23 = smov (!%p795_p13), 121  }
 0x4f2   : > { %619 = sbr.rel (%p795_p13) target bundleno = 1400 (0x578), region = 52  ;;  %s661_s24 = scalar_lea.vmem (!%p795_p13), [#allocation8], %s936_s19 }
 0x4f7   : > { %v623_v34 = vld [vmem:[%s620_s22 + $0x18] sm:$0xff]  ;;  %v621_v35 = vld [vmem:[%s620_s22] sm:$0xff]  ;;  %v622_v37 = vld [vmem:[%s620_s22 + $0x8] sm:$0xff]  ;;  %vm662_vm11 = vcmask 130048  }
 0x4f8   : > { %641 = vrot.lane.b32.xlu1 %v623_v34, %s902_s23  ;;  %637 = vrot.lane.b32.xlu0 %v621_v35, %s902_s23  ;;  %v624_v36 = vld [vmem:[%s620_s22 + $0x20] sm:$0xff]  ;;  %v626_v38 = vld [vmem:[%s620_s22 + $0x38] sm:$0xff] }
 0x4f9   : > { %v625_v39 = vld [vmem:[%s620_s22 + $0x30] sm:$0xff]  ;;  %v627_v41 = vld [vmem:[%s620_s22 + $0x48] sm:$0xff] }
 0x4fa   : > { %v628_v40 = vld [vmem:[%s620_s22 + $0x50] sm:$0xff] }
 0x4fc   : > { %643 = vrot.lane.b32.xlu1 %v624_v36, %s902_s23  ;;  %639 = vrot.lane.b32.xlu0 %v622_v37, %s902_s23 }
 0x500   : > { %647 = vrot.lane.b32.xlu1 %v626_v38, %s902_s23  ;;  %645 = vrot.lane.b32.xlu0 %v625_v39, %s902_s23 }
 0x504   : > { %651 = vrot.lane.b32.xlu1 %v628_v40, %s902_s23  ;;  %649 = vrot.lane.b32.xlu0 %v627_v41, %s902_s23 }
 0x56a   : > { %v642_v42 = vpop.permute.xlu1 %641  ;;  %v638_v43 = vpop.permute.xlu0 %637 }
 0x56b   : > { %665 = vst.msk [vmem:[%s661_s24 + $0x10] sm:$0xff] %vm662_vm11, %v642_v42  ;;  %663 = vst.msk [vmem:[%s661_s24] sm:$0xff] %vm662_vm11, %v638_v43 }
 0x56e   : > { %v644_v44 = vpop.permute.xlu1 %643  ;;  %v640_v45 = vpop.permute.xlu0 %639 }
 0x56f   : > { %666 = vst.msk [vmem:[%s661_s24 + $0x18] sm:$0xff] %vm662_vm11, %v644_v44  ;;  %664 = vst.msk [vmem:[%s661_s24 + $0x8] sm:$0xff] %vm662_vm11, %v640_v45 }
 0x572   : > { %v648_v46 = vpop.permute.xlu1 %647  ;;  %v646_v47 = vpop.permute.xlu0 %645 }
 0x573   : > { %668 = vst.msk [vmem:[%s661_s24 + $0x28] sm:$0xff] %vm662_vm11, %v648_v46  ;;  %667 = vst.msk [vmem:[%s661_s24 + $0x20] sm:$0xff] %vm662_vm11, %v646_v47 }
 0x576   : > { %v652_v48 = vpop.permute.xlu1 %651  ;;  %v650_v49 = vpop.permute.xlu0 %649 }
 0x577   : > { %670 = vst.msk [vmem:[%s661_s24 + $0x38] sm:$0xff] %vm662_vm11, %v652_v48  ;;  %669 = vst.msk [vmem:[%s661_s24 + $0x30] sm:$0xff] %vm662_vm11, %v650_v49 }
 0x578 PF: > { %p796_p0 = scmp.ne.s32.totalorder %s958_s26, 8 }
 0x579   : > { %s675_s25 = scalar_lea.vmem (!%p796_p0), [#allocation2], %s960_s27  ;;  %s903_s28 = smov (!%p796_p0), 120  }
 0x57a   : > { %674 = sbr.rel (%p796_p0) target bundleno = 1536 (0x600), region = 56  ;;  %s716_s26 = scalar_lea.vmem (!%p796_p0), [#allocation8], %s936_s19 }
 0x57f   : > { %v678_v50 = vld [vmem:[%s675_s25 + $0x18] sm:$0xff]  ;;  %v676_v51 = vld [vmem:[%s675_s25] sm:$0xff]  ;;  %v677_v53 = vld [vmem:[%s675_s25 + $0x8] sm:$0xff]  ;;  %vm717_vm12 = vcmask 130048  }
 0x580   : > { %696 = vrot.lane.b32.xlu1 %v678_v50, %s903_s28  ;;  %692 = vrot.lane.b32.xlu0 %v676_v51, %s903_s28  ;;  %v679_v52 = vld [vmem:[%s675_s25 + $0x20] sm:$0xff]  ;;  %v681_v54 = vld [vmem:[%s675_s25 + $0x38] sm:$0xff] }
 0x581   : > { %v680_v55 = vld [vmem:[%s675_s25 + $0x30] sm:$0xff]  ;;  %v682_v57 = vld [vmem:[%s675_s25 + $0x48] sm:$0xff] }
 0x582   : > { %v683_v56 = vld [vmem:[%s675_s25 + $0x50] sm:$0xff] }
 0x584   : > { %698 = vrot.lane.b32.xlu1 %v679_v52, %s903_s28  ;;  %694 = vrot.lane.b32.xlu0 %v677_v53, %s903_s28 }
 0x588   : > { %702 = vrot.lane.b32.xlu1 %v681_v54, %s903_s28  ;;  %700 = vrot.lane.b32.xlu0 %v680_v55, %s903_s28 }
 0x58c   : > { %706 = vrot.lane.b32.xlu1 %v683_v56, %s903_s28  ;;  %704 = vrot.lane.b32.xlu0 %v682_v57, %s903_s28 }
 0x5f2   : > { %v697_v58 = vpop.permute.xlu1 %696  ;;  %v693_v59 = vpop.permute.xlu0 %692 }
 0x5f3   : > { %720 = vst.msk [vmem:[%s716_s26 + $0x10] sm:$0xff] %vm717_vm12, %v697_v58  ;;  %718 = vst.msk [vmem:[%s716_s26] sm:$0xff] %vm717_vm12, %v693_v59 }
 0x5f6   : > { %v699_v60 = vpop.permute.xlu1 %698  ;;  %v695_v61 = vpop.permute.xlu0 %694 }
 0x5f7   : > { %721 = vst.msk [vmem:[%s716_s26 + $0x18] sm:$0xff] %vm717_vm12, %v699_v60  ;;  %719 = vst.msk [vmem:[%s716_s26 + $0x8] sm:$0xff] %vm717_vm12, %v695_v61 }
 0x5fa   : > { %v703_v62 = vpop.permute.xlu1 %702  ;;  %v701_v63 = vpop.permute.xlu0 %700 }
 0x5fb   : > { %723 = vst.msk [vmem:[%s716_s26 + $0x28] sm:$0xff] %vm717_vm12, %v703_v62  ;;  %722 = vst.msk [vmem:[%s716_s26 + $0x20] sm:$0xff] %vm717_vm12, %v701_v63 }
 0x5fe   : > { %v707_v0 = vpop.permute.xlu1 %706  ;;  %v705_v1 = vpop.permute.xlu0 %704 }
 0x5ff   : > { %725 = vst.msk [vmem:[%s716_s26 + $0x38] sm:$0xff] %vm717_vm12, %v707_v0  ;;  %724 = vst.msk [vmem:[%s716_s26 + $0x30] sm:$0xff] %vm717_vm12, %v705_v1 }
 0x600 PF: > { %s33_s18 = sadd.s32 1, %s887_s18  }
 0x601   : > { %p30_p1 = scmp.ge.s32.totalorder %s33_s18, 2  }
 0x602   :  { %s904_s19 = smov (%p30_p1), [#allocation8]  }
 0x603   :  { %32 = sbr.rel (!%p30_p1) target bundleno = 20 (0x14), region = 94  ;;  %s731_s27 = sshll.u32 (%p30_p1), %s904_s19, 4  ;;  %s732_s27 = int_to_ptr.vmem [resolvable:$true] %s731_s27 }
 0x604   :  { %s855_s29 = scalar_lea.vmem (%p30_p1), %s732_s27, 2048  ;;  %p860_p3 = scmp.lt.s32.totalorder (%p30_p1), %s732_s27, %s732_s27 }
 0x605   :  { %p856_p2 = scmp.ne.s32.totalorder (%p30_p1), %s732_s27, %s855_s29  ;;  %p861_p4 = scmp.lt.s32.totalorder (%p30_p1), %s855_s29, %s855_s29 }
 0x607   :  { %p862_p5 = por (%p30_p1), %p861_p4, %p860_p3 }
 0x609   :  { %p863_p6 = pnand %p862_p5, %p856_p2 }
 0x60b   :  { %866 = shalt.err (!%p863_p6)
}
 0x60c   :  { %737 = dma.vmem_to_hbm [thread:$0]  %s732_s27, 2048, %s1088_s2, [#allocation7], %s891_s15, %s891_s15, %s892_s16  }
 0x60d   :  { %883 = dma.done.wait [#allocation7], 2048  }
 0x60e   :  { %884 = vsyncadd [#allocation7], 4294965248 }
 0x60f   :  { %741 = vsyncpa [#allocation6], 1 }
 0x610   :  { %742 = vsyncpa [#allocation7], 1 }

</bundles_post_ra>
